<compile_context>
chip_gen: v5e
topology: v5e:2x2
jax: 0.10.0
libtpu: 0.0.40
codegen_flags: <defaults>
</compile_context>

<pallas_src>
import jax
import jax.numpy as jnp
from jax import lax
from jax.experimental import pallas as pl
from jax.experimental.pallas import tpu as pltpu


def _pick_tile_rows(R: int, C: int, max_tile_bytes: int) -> int:
    """Largest row-tile (multiple of 8, <= R) with ~max_tile_bytes of f32."""
    if R <= 8:
        return R  # block row dim equals full array dim -> always legal
    bytes_per_row = C * 4  # f32 accumulators dominate the VMEM footprint
    rows = max(8, ((max_tile_bytes // bytes_per_row) // 8) * 8)
    rows = min(rows, (R // 8) * 8)
    return max(rows, 8)


def _make_kernel(R: int, tile_rows: int, C: int, needs_mask: bool):
    def kernel(sim_ref, lab_ref, pos_out_ref, tot_out_ref, pos_acc, tot_acc):
        i = pl.program_id(1)  # row-block axis within this split (reduction)

        @pl.when(i == 0)
        def _init():
            pos_acc[...] = jnp.zeros_like(pos_acc)
            tot_acc[...] = jnp.zeros_like(tot_acc)

        # Hot path: upcast -> exp (EUP) -> elementwise accumulate (VPU).
        e = jnp.exp(7.0 * sim_ref[...].astype(jnp.float32))
        lab = lab_ref[...].astype(jnp.float32)

        if needs_mask:
            # Mask rows that fall past R (tail tile / padded extra blocks).
            blk = pl.program_id(0) * pl.num_programs(1) + i
            rows = blk * tile_rows + lax.broadcasted_iota(
                jnp.int32, (tile_rows, C), 0
            )
            valid = rows < R
            e = jnp.where(valid, e, 0.0)
            lab = jnp.where(valid, lab, 0.0)

        pos_acc[...] += e * lab
        tot_acc[...] += e

        @pl.when(i == pl.num_programs(1) - 1)
        def _finalize():
            # Single cross-sublane reduce per split; lane-dense (1,1,C) output.
            pos_out_ref[...] = jnp.sum(
                pos_acc[...], axis=0, keepdims=True
            ).reshape(1, 1, C)
            tot_out_ref[...] = jnp.sum(
                tot_acc[...], axis=0, keepdims=True
            ).reshape(1, 1, C)

    return kernel


def simclr_loss(
    sim: jax.Array,
    label: jax.Array,
    *,
    max_tile_bytes: int = 2 * 1024 * 1024,
    num_splits: int | None = None,
) -> jax.Array:
    """Pallas implementation of SimCLRLoss.forward(sim, label) -> scalar loss.

    `sim` / `label` are 2-D [R, C].  `label` may be int8/bool/bf16/f32 (cast to
    f32 inside the kernel); `sim` may be bf16 or f32.
    """
    assert sim.ndim == 2 and sim.shape == label.shape
    R, C = sim.shape

    tile_rows = _pick_tile_rows(R, C, max_tile_bytes)
    total_blocks = pl.cdiv(R, tile_rows)
    if num_splits is None:
        num_splits = 2 if total_blocks >= 2 else 1  # use both TCs on v7x
    num_splits = max(1, min(num_splits, total_blocks))
    nblk = pl.cdiv(total_blocks, num_splits)
    needs_mask = (R % tile_rows != 0) or (num_splits * nblk != total_blocks)
    last_blk = total_blocks - 1

    def in_map(s, i):
        b = s * nblk + i
        b = jnp.minimum(b, last_blk)  # clamp padded extra blocks (masked away)
        return (b, 0)

    kernel = _make_kernel(R, tile_rows, C, needs_mask)

    pos_out, tot_out = pl.pallas_call(
        kernel,
        out_shape=(
            jax.ShapeDtypeStruct((num_splits, 1, C), jnp.float32),
            jax.ShapeDtypeStruct((num_splits, 1, C), jnp.float32),
        ),
        grid_spec=pltpu.PrefetchScalarGridSpec(
            num_scalar_prefetch=0,
            grid=(num_splits, nblk),
            in_specs=[
                pl.BlockSpec((tile_rows, C), in_map),
                pl.BlockSpec((tile_rows, C), in_map),
            ],
            out_specs=[
                pl.BlockSpec((1, 1, C), lambda s, i: (s, 0, 0)),
                pl.BlockSpec((1, 1, C), lambda s, i: (s, 0, 0)),
            ],
            scratch_shapes=[
                pltpu.VMEM((tile_rows, C), jnp.float32),  # sum(exp(7*sim)*label)
                pltpu.VMEM((tile_rows, C), jnp.float32),  # sum(exp(7*sim))
            ],
        ),
        compiler_params=pltpu.CompilerParams(
            dimension_semantics=("parallel", "arbitrary"),
            vmem_limit_bytes=48 * 1024 * 1024,  # headroom, still < v7x 64 MiB
        ),
    )(sim, label)

    # Tiny final combine in plain JAX (one add per split + one log).
    pos = jnp.sum(pos_out)
    tot = jnp.sum(tot_out)
    return -jnp.log(pos / (tot - pos + 1e-8))


def _simclr_loss_ref(sim, label):
    e = jnp.exp(7.0 * sim.astype(jnp.float32))
    pos = jnp.sum(e * label.astype(jnp.float32))
    return -jnp.log(pos / (jnp.sum(e) - pos + 1e-8))


if __name__ == "__main__":
    key = jax.random.PRNGKey(0)
    k1, k2, k3, k4 = jax.random.split(key, 4)

    # Test 1: divisible rows, int8 label mask (narrow HBM label stream).
    R, C = 16, 128
    sim = jax.random.uniform(k1, (R, C), jnp.float32, minval=-1.0, maxval=1.0)
    label_b = jax.random.uniform(k2, (R, C)) < 0.1
    label_b = label_b.at[:, 0].set(True)  # at least one positive per row
    loss = simclr_loss(sim, label_b.astype(jnp.int8))
    jax.block_until_ready(loss)
    ref = _simclr_loss_ref(sim, label_b.astype(jnp.float32))
    assert jnp.allclose(loss, ref, rtol=1e-4, atol=1e-5), (loss, ref)

    # Test 2: non-divisible rows (tail masking) + 2-way split, f32 label.
    R2, C2 = 20, 256
    sim2 = jax.random.uniform(k3, (R2, C2), jnp.float32, minval=-1.0, maxval=1.0)
    label2 = (jax.random.uniform(k4, (R2, C2)) < 0.1).astype(jnp.float32)
    label2 = label2.at[:, 0].set(1.0)
    loss2 = simclr_loss(sim2, label2)
    jax.block_until_ready(loss2)
    ref2 = _simclr_loss_ref(sim2, label2)
    assert jnp.allclose(loss2, ref2, rtol=1e-4, atol=1e-5), (loss2, ref2)

    print("KERNEL_OK")
</pallas_src>

<mosaic_0001>
module attributes {stable_mosaic.version = 11 : i64} {
  func.func @kernel(%arg0: i32, %arg1: i32, %arg2: memref<16x128xf32, #tpu.memory_space<vmem>>, %arg3: memref<16x128xi8, #tpu.memory_space<vmem>>, %arg4: memref<1x1x128xf32, #tpu.memory_space<vmem>>, %arg5: memref<1x1x128xf32, #tpu.memory_space<vmem>>, %arg6: memref<16x128xf32, #tpu.memory_space<vmem>>, %arg7: memref<16x128xf32, #tpu.memory_space<vmem>>) attributes {dimension_semantics = [#tpu.dimension_semantics<parallel>, #tpu.dimension_semantics<arbitrary>], iteration_bounds = array<i64: 1, 1>, scalar_prefetch = 0 : i64, scratch_operands = 2 : i64, tpu.core_type = #tpu.core_type<tc>, window_params = [{transform_indices = @transform_0, window_bounds = array<i64: 16, 128>}, {transform_indices = @transform_1, window_bounds = array<i64: 16, 128>}, {transform_indices = @transform_2, window_bounds = array<i64: 1, 1, 128>}, {transform_indices = @transform_3, window_bounds = array<i64: 1, 1, 128>}]} {
    %c0_i32 = arith.constant 0 : i32
    %0 = arith.cmpi eq, %arg1, %c0_i32 : i32
    %1 = arith.extui %0 : i1 to i32
    %c0_i32_0 = arith.constant 0 : i32
    %2 = arith.cmpi ne, %1, %c0_i32_0 : i32
    scf.if %2 {
      %cst_14 = arith.constant 0.000000e+00 : f32
      %19 = vector.broadcast %cst_14 : f32 to vector<16x128xf32>
      %c0_15 = arith.constant 0 : index
      %c0_16 = arith.constant 0 : index
      %20 = vector.load %arg6[%c0_15, %c0_16] : memref<16x128xf32, #tpu.memory_space<vmem>>, vector<16x128xf32>
      tpu.vector_store %arg6[%c0_15, %c0_16], %19 {strides = array<i32>} : memref<16x128xf32, #tpu.memory_space<vmem>>, vector<16x128xf32>,
      %cst_17 = arith.constant 0.000000e+00 : f32
      %21 = vector.broadcast %cst_17 : f32 to vector<16x128xf32>
      %c0_18 = arith.constant 0 : index
      %c0_19 = arith.constant 0 : index
      %22 = vector.load %arg7[%c0_18, %c0_19] : memref<16x128xf32, #tpu.memory_space<vmem>>, vector<16x128xf32>
      tpu.vector_store %arg7[%c0_18, %c0_19], %21 {strides = array<i32>} : memref<16x128xf32, #tpu.memory_space<vmem>>, vector<16x128xf32>,
    } else {
    }
    %c0 = arith.constant 0 : index
    %c0_1 = arith.constant 0 : index
    %3 = vector.load %arg2[%c0, %c0_1] : memref<16x128xf32, #tpu.memory_space<vmem>>, vector<16x128xf32>
    %cst = arith.constant 7.000000e+00 : f32
    %4 = vector.broadcast %cst : f32 to vector<16x128xf32>
    %5 = arith.mulf %4, %3 : vector<16x128xf32>
    %6 = math.exp %5 : vector<16x128xf32>
    %c0_2 = arith.constant 0 : index
    %c0_3 = arith.constant 0 : index
    %7 = vector.load %arg3[%c0_2, %c0_3] : memref<16x128xi8, #tpu.memory_space<vmem>>, vector<16x128xi8>
    %8 = arith.sitofp %7 : vector<16x128xi8> to vector<16x128xf32>
    %c0_4 = arith.constant 0 : index
    %c0_5 = arith.constant 0 : index
    %9 = vector.load %arg6[%c0_4, %c0_5] : memref<16x128xf32, #tpu.memory_space<vmem>>, vector<16x128xf32>
    %10 = arith.mulf %6, %8 : vector<16x128xf32>
    %11 = arith.addf %9, %10 : vector<16x128xf32>
    %c0_6 = arith.constant 0 : index
    %c0_7 = arith.constant 0 : index
    %12 = vector.load %arg6[%c0_6, %c0_7] : memref<16x128xf32, #tpu.memory_space<vmem>>, vector<16x128xf32>
    tpu.vector_store %arg6[%c0_6, %c0_7], %11 {strides = array<i32>} : memref<16x128xf32, #tpu.memory_space<vmem>>, vector<16x128xf32>,
    %c0_8 = arith.constant 0 : index
    %c0_9 = arith.constant 0 : index
    %13 = vector.load %arg7[%c0_8, %c0_9] : memref<16x128xf32, #tpu.memory_space<vmem>>, vector<16x128xf32>
    %14 = arith.addf %13, %6 : vector<16x128xf32>
    %c0_10 = arith.constant 0 : index
    %c0_11 = arith.constant 0 : index
    %15 = vector.load %arg7[%c0_10, %c0_11] : memref<16x128xf32, #tpu.memory_space<vmem>>, vector<16x128xf32>
    tpu.vector_store %arg7[%c0_10, %c0_11], %14 {strides = array<i32>} : memref<16x128xf32, #tpu.memory_space<vmem>>, vector<16x128xf32>,
    %c0_i32_12 = arith.constant 0 : i32
    %16 = arith.cmpi eq, %arg1, %c0_i32_12 : i32
    %17 = arith.extui %16 : i1 to i32
    %c0_i32_13 = arith.constant 0 : i32
    %18 = arith.cmpi ne, %17, %c0_i32_13 : i32
    scf.if %18 {
      %c0_14 = arith.constant 0 : index
      %c0_15 = arith.constant 0 : index
      %19 = vector.load %arg6[%c0_14, %c0_15] : memref<16x128xf32, #tpu.memory_space<vmem>>, vector<16x128xf32>
      %cst_16 = arith.constant dense<0.000000e+00> : vector<128xf32>
      %20 = vector.multi_reduction <add>, %19, %cst_16 [0] : vector<16x128xf32> to vector<128xf32>
      %21 = vector.shape_cast %20 : vector<128xf32> to vector<1x128xf32>
      %22 = vector.shape_cast %21 : vector<1x128xf32> to vector<1x1x128xf32>
      %c0_17 = arith.constant 0 : index
      %c0_18 = arith.constant 0 : index
      %c0_19 = arith.constant 0 : index
      %23 = vector.load %arg4[%c0_17, %c0_18, %c0_19] : memref<1x1x128xf32, #tpu.memory_space<vmem>>, vector<1x1x128xf32>
      tpu.vector_store %arg4[%c0_17, %c0_18, %c0_19], %22 {strides = array<i32>} : memref<1x1x128xf32, #tpu.memory_space<vmem>>, vector<1x1x128xf32>,
      %c0_20 = arith.constant 0 : index
      %c0_21 = arith.constant 0 : index
      %24 = vector.load %arg7[%c0_20, %c0_21] : memref<16x128xf32, #tpu.memory_space<vmem>>, vector<16x128xf32>
      %cst_22 = arith.constant dense<0.000000e+00> : vector<128xf32>
      %25 = vector.multi_reduction <add>, %24, %cst_22 [0] : vector<16x128xf32> to vector<128xf32>
      %26 = vector.shape_cast %25 : vector<128xf32> to vector<1x128xf32>
      %27 = vector.shape_cast %26 : vector<1x128xf32> to vector<1x1x128xf32>
      %c0_23 = arith.constant 0 : index
      %c0_24 = arith.constant 0 : index
      %c0_25 = arith.constant 0 : index
      %28 = vector.load %arg5[%c0_23, %c0_24, %c0_25] : memref<1x1x128xf32, #tpu.memory_space<vmem>>, vector<1x1x128xf32>
      tpu.vector_store %arg5[%c0_23, %c0_24, %c0_25], %27 {strides = array<i32>} : memref<1x1x128xf32, #tpu.memory_space<vmem>>, vector<1x1x128xf32>,
    } else {
    }
    return
  }
  func.func @transform_0(%arg0: i32, %arg1: i32) -> (i32, i32) {
    %c1_i32 = arith.constant 1 : i32
    %0 = arith.muli %arg0, %c1_i32 : i32
    %1 = arith.addi %0, %arg1 : i32
    %c0_i32 = arith.constant 0 : i32
    %2 = arith.minsi %1, %c0_i32 : i32
    %c0_i32_0 = arith.constant 0 : i32
    %c0_i32_1 = arith.constant 0 : i32
    return %2, %c0_i32_0 : i32, i32
  }
  func.func @transform_1(%arg0: i32, %arg1: i32) -> (i32, i32) {
    %c1_i32 = arith.constant 1 : i32
    %0 = arith.muli %arg0, %c1_i32 : i32
    %1 = arith.addi %0, %arg1 : i32
    %c0_i32 = arith.constant 0 : i32
    %2 = arith.minsi %1, %c0_i32 : i32
    %c0_i32_0 = arith.constant 0 : i32
    %c0_i32_1 = arith.constant 0 : i32
    return %2, %c0_i32_0 : i32, i32
  }
  func.func @transform_2(%arg0: i32, %arg1: i32) -> (i32, i32, i32) {
    %c0_i32 = arith.constant 0 : i32
    %c0_i32_0 = arith.constant 0 : i32
    %c0_i32_1 = arith.constant 0 : i32
    return %arg0, %c0_i32, %c0_i32_0 : i32, i32, i32
  }
  func.func @transform_3(%arg0: i32, %arg1: i32) -> (i32, i32, i32) {
    %c0_i32 = arith.constant 0 : i32
    %c0_i32_0 = arith.constant 0 : i32
    %c0_i32_1 = arith.constant 0 : i32
    return %arg0, %c0_i32, %c0_i32_0 : i32, i32, i32
  }
}

</mosaic_0001>

<bundles_post_ra>
// kernel: tpu_custom_call.1
= control target key start
LH: loop header
LB: loop body
LE: loop exit
PB: predicated region body
PF: predicated region fallthrough
CT: control target
= control target key end

     0   :  { %9 = vsyncpa [#allocation5], 0  ;;  %s324_s0 = inlined_call_operand.hbm [shape: f32[16,128], index: 0, kind: input, shape index: {}]   ;;  %s325_s1 = inlined_call_operand.hbm [shape: s8[16,128], index: 1, kind: input, shape index: {}]   ;;  %s326_s2 = inlined_call_operand.hbm [shape: f32[1,1,128], index: 2, kind: output, shape index: {0}]   ;;  %s327_s3 = inlined_call_operand.hbm [shape: f32[1,1,128], index: 3, kind: output, shape index: {1}]  }
   0x1   :  { %10 = vsyncpa [#allocation8], 0 }
   0x2   :  { %11 = vsyncpa [#allocation6], 0 }
   0x3   :  { %12 = vsyncpa [#allocation11], 0  ;;  %s23_s14 = sshll.u32 %s324_s0, 4  ;;  %s284_s15 = smov [#allocation4]   ;;  %s24_s14 = int_to_ptr.hbm [resolvable:$true] %s23_s14 }
   0x4   :  { %s25_s16 = sshll.u32 %s284_s15, 4  ;;  %s42_s19 = sshll.u32 %s325_s1, 4  ;;  %s26_s16 = int_to_ptr.vmem [resolvable:$true] %s25_s16  ;;  %s43_s19 = int_to_ptr.hbm [resolvable:$true] %s42_s19 }
   0x5   :  { %s285_s20 = smov 128   ;;  %s286_s21 = smov 8  }
   0x6   :  { %31 = dma.hbm_to_vmem [thread:$0]  %s24_s14, 256, %s26_s16, [#allocation5], %s285_s20, %s285_s20, %s286_s21  }
   0x7   :  { %s287_s22 = smov [#allocation7]   ;;  %s288_s24 = smov 32  }
   0x8   :  { %s44_s23 = sshll.u32 %s287_s22, 4  ;;  %s289_s25 = smov 2   ;;  %s45_s23 = int_to_ptr.vmem [resolvable:$true] %s44_s23 }
   0x9   :  { %50 = dma.hbm_to_vmem [thread:$0]  %s43_s19, 64, %s45_s23, [#allocation8], %s288_s24, %s288_s24, %s289_s25  }
   0xa   :  { %276 = dma.done.wait [#allocation5], 256  }
   0xb   :  { %277 = vsyncadd [#allocation5], 4294967040 }
   0xc   :  { %278 = dma.done.wait [#allocation8], 64  }
   0xd   :  { %279 = vsyncadd [#allocation8], 4294967232  ;;  %v75_v0 = vld [vmem:[#allocation4] sm:$0xff]  ;;  %v76_v1 = vld [vmem:[#allocation4 + $0x8] sm:$0xff]  ;;  %s290_s0 = smov [#allocation10]   ;;  %s144_s28 = sshll.u32 %s327_s3, 4  ;;  %s145_s28 = int_to_ptr.hbm [resolvable:$true] %s144_s28 }
   0xe   :  { %v77_v2 = vmul.f32 7.0, %v75_v0  ;;  %v78_v3 = vmul.f32 7.0, %v76_v1  ;;  %v165_v4 = vld [vmem:[#allocation7] sm:$0xf]   ;;  %s142_s1 = sshll.u32 %s290_s0, 4  ;;  %s291_s29 = smov [#allocation9]   ;;  %s143_s1 = int_to_ptr.vmem [resolvable:$true] %s142_s1 }
   0xf   :  { %v166_v7 = vunpack.c.0.s8 %v165_v4  ;;  %v167_v8 = vunpack.c.1.s8 %v165_v4  ;;  %s131_s30 = sshll.u32 %s291_s29, 4  ;;  %s133_s6 = sshll.u32 %s326_s2, 4  ;;  %s132_s30 = int_to_ptr.vmem [resolvable:$true] %s131_s30  ;;  %s134_s6 = int_to_ptr.hbm [resolvable:$true] %s133_s6 }
  0x10   :  { %v79_v5 = vmul.f32 1.442695, %v77_v2  ;;  %v81_v6 = vmul.f32 1.442695, %v78_v3 }
  0x11   :  { %v87_v9 = vcvt.s32.f32 %v166_v7  ;;  %v88_v10 = vcvt.s32.f32 %v167_v8 }
  0x12   :  { %176 = vpow2.f32 %v79_v5 }
  0x13   :  { %178 = vpow2.f32 %v81_v6 }
  0x18   :  { %v177_v11 = vpop.eup %176 }
  0x19   :  { %v179_v12 = vpop.eup %178  ;;  %v91_v13 = vmul.f32 %v177_v11, %v87_v9 }
  0x1a   :  { %v92_v14 = vmul.f32 %v179_v12, %v88_v10  ;;  %v118_v15 = vadd.f32 %v179_v12, %v177_v11 }
  0x1c   :  { %v108_v16 = vadd.f32 %v92_v14, %v91_v13  ;;  %v119_v17 = vrot.slane %v118_v15, 4 }
  0x1e   :  { %v109_v18 = vrot.slane %v108_v16, 4  ;;  %v120_v19 = vadd.f32 %v119_v17, %v118_v15 }
  0x20   :  { %v110_v20 = vadd.f32 %v109_v18, %v108_v16  ;;  %v121_v21 = vrot.slane %v120_v19, 2 }
  0x22   :  { %v111_v22 = vrot.slane %v110_v20, 2  ;;  %v122_v23 = vadd.f32 %v121_v21, %v120_v19 }
  0x24   :  { %v112_v24 = vadd.f32 %v111_v22, %v110_v20  ;;  %v123_v25 = vrot.slane %v122_v23, 1 }
  0x26   :  { %v113_v26 = vrot.slane %v112_v24, 1  ;;  %v124_v27 = vadd.f32 %v123_v25, %v122_v23 }
  0x28   :  { %v114_v28 = vadd.f32 %v113_v26, %v112_v24  ;;  %125 = vst [vmem:[#allocation10] sm:$0x1] %v124_v27 }
  0x29   :  { %147 = dma.vmem_to_hbm [thread:$0]  %s143_s1, 16, %s145_s28, [#allocation11]  }
  0x2a   :  { %115 = vst [vmem:[#allocation9] sm:$0x1] %v114_v28 }
  0x2b   :  { %136 = dma.vmem_to_hbm [thread:$0]  %s132_s30, 16, %s134_s6, [#allocation6]  }
  0x2c   :  { %280 = dma.done.wait [#allocation6], 16  }
  0x2d   :  { %281 = vsyncadd [#allocation6], 4294967280 }
  0x2e   :  { %282 = dma.done.wait [#allocation11], 16  }
  0x2f   :  { %283 = vsyncadd [#allocation11], 4294967280 }
  0x30   :  { %156 = vsyncpa [#allocation5], 1 }
  0x31   :  { %157 = vsyncpa [#allocation8], 1 }
  0x32   :  { %158 = vsyncpa [#allocation6], 1 }
  0x33   :  { %159 = vsyncpa [#allocation11], 1 }

</bundles_post_ra>
